<compile_context>
chip_gen: v5e
topology: v5e:2x2
jax: 0.10.0
libtpu: 0.0.40
codegen_flags: <defaults>
</compile_context>

<pallas_src>
import functools

import jax
import jax.numpy as jnp
from jax.experimental import pallas as pl
from jax.experimental.pallas import tpu as pltpu

_LANE = 128
_BF16_SUBLANE = 16


def _round_up(x, m):
    return ((x + m - 1) // m) * m


def _pad_to(x, shape):
    pads = [(0, t - s) for s, t in zip(x.shape, shape)]
    return jnp.pad(x, pads)


def _sage3_kernel(a0_ref, a1_ref, a2_ref, x_ref,
                  ws0_ref, wn0_ref, b0_ref,
                  ws1_ref, wn1_ref, b1_ref,
                  ws2_ref, wn2_ref, b2_ref,
                  out_ref, *, dst_pads):
    """Fused 3-layer SAGEConv('mean') forward; intermediates stay on-chip.

    Per layer (split-dot form, no concat copy):
        out = h_dst @ W_self + (A @ h_src) @ W_neigh + b
    ReLU after layers 0 and 1.
    """
    n1p, n2p, n3p = dst_pads

    def layer(a_ref, h_src, ws_ref, wn_ref, b_ref, n_dst, relu):
        # Mean neighbor aggregation on the MXU (A is row-normalized, bf16,
        # padded columns are exactly zero).
        h_neigh = jnp.dot(a_ref[...], h_src,
                          preferred_element_type=jnp.float32)
        # Split self / neighbor projections, f32 accumulation on the MXU.
        out = jnp.dot(h_src[:n_dst, :], ws_ref[...],
                      preferred_element_type=jnp.float32)
        out = out + jnp.dot(h_neigh.astype(jnp.bfloat16), wn_ref[...],
                            preferred_element_type=jnp.float32)
        out = out + b_ref[...]                     # bias epilogue (f32)
        if relu:
            out = jnp.maximum(out, 0.0)
        return out

    h0 = x_ref[...]                                             # (n0p, fp) bf16
    h1 = layer(a0_ref, h0, ws0_ref, wn0_ref, b0_ref,
               n1p, True).astype(jnp.bfloat16)
    h2 = layer(a1_ref, h1, ws1_ref, wn1_ref, b1_ref,
               n2p, True).astype(jnp.bfloat16)
    h3 = layer(a2_ref, h2, ws2_ref, wn2_ref, b2_ref, n3p, False)
    out_ref[...] = h3                                           # f32, lane-dense


def sage_pack_params(params):
    """One-time padding / bf16 cast of the 3 SAGEConv weight sets."""
    in_feats = params[0][0].shape[0]
    hidden = params[0][0].shape[1]
    fp = _round_up(max(in_feats, hidden), _LANE)
    packed = []
    for w_self, w_neigh, bias in params:
        ws = _pad_to(w_self, (fp, fp)).astype(jnp.bfloat16)
        wn = _pad_to(w_neigh, (fp, fp)).astype(jnp.bfloat16)
        b = _pad_to(bias.reshape(1, -1), (1, fp)).astype(jnp.float32)
        packed.append((ws, wn, b))
    return packed, hidden


@functools.partial(jax.jit, static_argnames=("hidden_size",))
def sage_forward(blocks, x, packed_params, *, hidden_size):
    """Forward pass of the SAGE module (3 layers, ReLU between layers).

    blocks        : list of 3 dense row-normalized adjacencies (n_dst, n_src)
    x             : (n_src_0, in_feats) f32 node features
    packed_params : output of sage_pack_params (padded bf16 weights, f32 bias)
    """
    assert len(blocks) == 3 and len(packed_params) == 3
    n0 = x.shape[0]
    fp = packed_params[0][0].shape[1]
    dst_counts = [a.shape[0] for a in blocks]                   # n1, n2, n3

    # n0 / n1 / n2 feed the lane (contracting) dims of the adjacencies -> 128.
    # n3 only ever appears as an M/sublane dim -> bf16 sublane quantum (16).
    n0p = _round_up(n0, _LANE)
    dpads = [_round_up(dst_counts[0], _LANE),
             _round_up(dst_counts[1], _LANE),
             _round_up(dst_counts[2], _BF16_SUBLANE)]
    src_pads = [n0p, dpads[0], dpads[1]]

    # Adjacencies / features: zero-padded, bf16 (MXU-native, halves DMA bytes).
    adjs = [_pad_to(a, (dp, sp)).astype(jnp.bfloat16)
            for a, dp, sp in zip(blocks, dpads, src_pads)]
    xp = _pad_to(x, (n0p, fp)).astype(jnp.bfloat16)

    operands = [adjs[0], adjs[1], adjs[2], xp]
    for ws, wn, b in packed_params:
        operands += [ws, wn, b]

    # Advisory cost hint for XLA's scheduler.
    flops = 0
    for dp, sp in zip(dpads, src_pads):
        flops += 2 * dp * sp * fp          # aggregation matmul
        flops += 2 * 2 * dp * fp * fp      # self + neighbor projections
    bytes_accessed = sum(int(op.size) * op.dtype.itemsize for op in operands)
    bytes_accessed += dpads[2] * fp * 4    # f32 output

    kernel = functools.partial(_sage3_kernel, dst_pads=tuple(dpads))
    vmem_spec = pl.BlockSpec(memory_space=pltpu.MemorySpace.VMEM)

    out_padded = pl.pallas_call(
        kernel,
        out_shape=jax.ShapeDtypeStruct((dpads[2], fp), jnp.float32),
        in_specs=[vmem_spec] * len(operands),
        out_specs=vmem_spec,
        cost_estimate=pl.CostEstimate(flops=flops, transcendentals=0,
                                      bytes_accessed=bytes_accessed),
    )(*operands)

    # Strip padding (padded rows/cols never contaminate real entries).
    return out_padded[:dst_counts[2], :hidden_size]


def _make_block(key, num_dst, num_src):
    """Synthetic dense row-normalized adjacency for 'mean' aggregation."""
    mask = jax.random.bernoulli(key, p=0.3, shape=(num_dst, num_src))
    mask = mask.astype(jnp.float32)
    # guarantee at least one neighbor (self edge: dst i == src i in a block)
    mask = mask.at[jnp.arange(num_dst), jnp.arange(num_dst)].set(1.0)
    deg = jnp.sum(mask, axis=1, keepdims=True)
    return mask / deg


def _init_sage_conv(key, in_feats, out_feats):
    k1, k2, k3 = jax.random.split(key, 3)
    scale = 1.0 / jnp.sqrt(jnp.float32(in_feats))
    w_self = jax.random.uniform(k1, (in_feats, out_feats), jnp.float32,
                                -scale, scale)
    w_neigh = jax.random.uniform(k2, (in_feats, out_feats), jnp.float32,
                                 -scale, scale)
    bias = jax.random.uniform(k3, (1, out_feats), jnp.float32, -scale, scale)
    return w_self, w_neigh, bias


def _ref_forward(blocks, x, params):
    """Pure-JAX reference mirroring the kernel numerics (bf16 MXU operands,
    f32 accumulation, split self/neighbor dots)."""
    h = x.astype(jnp.bfloat16)
    n_layers = len(params)
    for i, (adj, (ws, wn, b)) in enumerate(zip(blocks, params)):
        n_dst = adj.shape[0]
        h_neigh = jnp.dot(adj.astype(jnp.bfloat16), h,
                          preferred_element_type=jnp.float32)
        o = (jnp.dot(h[:n_dst], ws.astype(jnp.bfloat16),
                     preferred_element_type=jnp.float32)
             + jnp.dot(h_neigh.astype(jnp.bfloat16), wn.astype(jnp.bfloat16),
                       preferred_element_type=jnp.float32)
             + b)
        if i != n_layers - 1:
            o = jnp.maximum(o, 0.0)
            h = o.astype(jnp.bfloat16)
        else:
            h = o
    return h


if __name__ == "__main__":
    key = jax.random.PRNGKey(0)

    in_size, hidden_size = 16, 32
    # layer-wise fan-in node counts (src of layer l == dst of layer l-1)
    n0, n1, n2, n3 = 64, 32, 16, 8

    k_feat, k_b0, k_b1, k_b2, k_l0, k_l1, k_l2 = jax.random.split(key, 7)

    x = jax.random.normal(k_feat, (n0, in_size), jnp.float32)

    blocks = [
        _make_block(k_b0, n1, n0),
        _make_block(k_b1, n2, n1),
        _make_block(k_b2, n3, n2),
    ]

    params = [
        _init_sage_conv(k_l0, in_size, hidden_size),
        _init_sage_conv(k_l1, hidden_size, hidden_size),
        _init_sage_conv(k_l2, hidden_size, hidden_size),
    ]

    # One-time weight packing (outside the per-call path), jitted forward.
    packed_params, hidden = sage_pack_params(params)

    out = sage_forward(blocks, x, packed_params, hidden_size=hidden)
    out = jax.block_until_ready(out)

    ref = _ref_forward(blocks, x, params)
    assert out.shape == (n3, hidden_size)
    assert jnp.allclose(out, ref, atol=1e-2, rtol=1e-2)

    # TODO(synk): the `inference` method's layer-wise dataloader loop and the
    # unused `predictor` MLP are host-side orchestration / not part of
    # forward(); only `forward` is implemented.
    print("KERNEL_OK")
</pallas_src>

<mosaic_0001>
module attributes {stable_mosaic.version = 11 : i64} {
  func.func @_sage3_kernel(%arg0: memref<128x128xbf16, #tpu.memory_space<vmem>>, %arg1: memref<128x128xbf16, #tpu.memory_space<vmem>>, %arg2: memref<16x128xbf16, #tpu.memory_space<vmem>>, %arg3: memref<128x128xbf16, #tpu.memory_space<vmem>>, %arg4: memref<128x128xbf16, #tpu.memory_space<vmem>>, %arg5: memref<128x128xbf16, #tpu.memory_space<vmem>>, %arg6: memref<1x128xf32, #tpu.memory_space<vmem>>, %arg7: memref<128x128xbf16, #tpu.memory_space<vmem>>, %arg8: memref<128x128xbf16, #tpu.memory_space<vmem>>, %arg9: memref<1x128xf32, #tpu.memory_space<vmem>>, %arg10: memref<128x128xbf16, #tpu.memory_space<vmem>>, %arg11: memref<128x128xbf16, #tpu.memory_space<vmem>>, %arg12: memref<1x128xf32, #tpu.memory_space<vmem>>, %arg13: memref<16x128xf32, #tpu.memory_space<vmem>>) attributes {dimension_semantics = [], scalar_prefetch = 0 : i64, scratch_operands = 0 : i64, tpu.core_type = #tpu.core_type<tc>} {
    %c0 = arith.constant 0 : index
    %c0_0 = arith.constant 0 : index
    %0 = vector.load %arg3[%c0, %c0_0] : memref<128x128xbf16, #tpu.memory_space<vmem>>, vector<128x128xbf16>
    %c0_1 = arith.constant 0 : index
    %c0_2 = arith.constant 0 : index
    %1 = vector.load %arg0[%c0_1, %c0_2] : memref<128x128xbf16, #tpu.memory_space<vmem>>, vector<128x128xbf16>
    %cst = arith.constant dense<0.000000e+00> : vector<128x128xf32>
    %2 = tpu.matmul %1, %0, %cst {dimension_numbers = #tpu.dot_dimension_numbers<[1], [0], [0], [1], [0, 0, 1, 1], [], []>} : vector<128x128xbf16>, vector<128x128xbf16>, vector<128x128xf32> -> vector<128x128xf32>
    %c0_3 = arith.constant 0 : index
    %c0_4 = arith.constant 0 : index
    %3 = vector.load %arg4[%c0_3, %c0_4] : memref<128x128xbf16, #tpu.memory_space<vmem>>, vector<128x128xbf16>
    %cst_5 = arith.constant dense<0.000000e+00> : vector<128x128xf32>
    %4 = tpu.matmul %0, %3, %cst_5 {dimension_numbers = #tpu.dot_dimension_numbers<[1], [0], [0], [1], [0, 0, 1, 1], [], []>} : vector<128x128xbf16>, vector<128x128xbf16>, vector<128x128xf32> -> vector<128x128xf32>
    %5 = arith.truncf %2 : vector<128x128xf32> to vector<128x128xbf16>
    %c0_6 = arith.constant 0 : index
    %c0_7 = arith.constant 0 : index
    %6 = vector.load %arg5[%c0_6, %c0_7] : memref<128x128xbf16, #tpu.memory_space<vmem>>, vector<128x128xbf16>
    %cst_8 = arith.constant dense<0.000000e+00> : vector<128x128xf32>
    %7 = tpu.matmul %5, %6, %cst_8 {dimension_numbers = #tpu.dot_dimension_numbers<[1], [0], [0], [1], [0, 0, 1, 1], [], []>} : vector<128x128xbf16>, vector<128x128xbf16>, vector<128x128xf32> -> vector<128x128xf32>
    %8 = arith.addf %4, %7 : vector<128x128xf32>
    %c0_9 = arith.constant 0 : index
    %c0_10 = arith.constant 0 : index
    %9 = vector.load %arg6[%c0_9, %c0_10] : memref<1x128xf32, #tpu.memory_space<vmem>>, vector<1x128xf32>
    %10 = vector.broadcast %9 : vector<1x128xf32> to vector<128x128xf32>
    %11 = arith.addf %8, %10 : vector<128x128xf32>
    %cst_11 = arith.constant 0.000000e+00 : f32
    %12 = vector.broadcast %cst_11 : f32 to vector<128x128xf32>
    %13 = arith.maximumf %11, %12 : vector<128x128xf32>
    %14 = arith.truncf %13 : vector<128x128xf32> to vector<128x128xbf16>
    %c0_12 = arith.constant 0 : index
    %c0_13 = arith.constant 0 : index
    %15 = vector.load %arg1[%c0_12, %c0_13] : memref<128x128xbf16, #tpu.memory_space<vmem>>, vector<128x128xbf16>
    %cst_14 = arith.constant dense<0.000000e+00> : vector<128x128xf32>
    %16 = tpu.matmul %15, %14, %cst_14 {dimension_numbers = #tpu.dot_dimension_numbers<[1], [0], [0], [1], [0, 0, 1, 1], [], []>} : vector<128x128xbf16>, vector<128x128xbf16>, vector<128x128xf32> -> vector<128x128xf32>
    %c0_15 = arith.constant 0 : index
    %c0_16 = arith.constant 0 : index
    %17 = vector.load %arg7[%c0_15, %c0_16] : memref<128x128xbf16, #tpu.memory_space<vmem>>, vector<128x128xbf16>
    %cst_17 = arith.constant dense<0.000000e+00> : vector<128x128xf32>
    %18 = tpu.matmul %14, %17, %cst_17 {dimension_numbers = #tpu.dot_dimension_numbers<[1], [0], [0], [1], [0, 0, 1, 1], [], []>} : vector<128x128xbf16>, vector<128x128xbf16>, vector<128x128xf32> -> vector<128x128xf32>
    %19 = arith.truncf %16 : vector<128x128xf32> to vector<128x128xbf16>
    %c0_18 = arith.constant 0 : index
    %c0_19 = arith.constant 0 : index
    %20 = vector.load %arg8[%c0_18, %c0_19] : memref<128x128xbf16, #tpu.memory_space<vmem>>, vector<128x128xbf16>
    %cst_20 = arith.constant dense<0.000000e+00> : vector<128x128xf32>
    %21 = tpu.matmul %19, %20, %cst_20 {dimension_numbers = #tpu.dot_dimension_numbers<[1], [0], [0], [1], [0, 0, 1, 1], [], []>} : vector<128x128xbf16>, vector<128x128xbf16>, vector<128x128xf32> -> vector<128x128xf32>
    %22 = arith.addf %18, %21 : vector<128x128xf32>
    %c0_21 = arith.constant 0 : index
    %c0_22 = arith.constant 0 : index
    %23 = vector.load %arg9[%c0_21, %c0_22] : memref<1x128xf32, #tpu.memory_space<vmem>>, vector<1x128xf32>
    %24 = vector.broadcast %23 : vector<1x128xf32> to vector<128x128xf32>
    %25 = arith.addf %22, %24 : vector<128x128xf32>
    %cst_23 = arith.constant 0.000000e+00 : f32
    %26 = vector.broadcast %cst_23 : f32 to vector<128x128xf32>
    %27 = arith.maximumf %25, %26 : vector<128x128xf32>
    %28 = arith.truncf %27 : vector<128x128xf32> to vector<128x128xbf16>
    %c0_24 = arith.constant 0 : index
    %c0_25 = arith.constant 0 : index
    %29 = vector.load %arg2[%c0_24, %c0_25] : memref<16x128xbf16, #tpu.memory_space<vmem>>, vector<16x128xbf16>
    %cst_26 = arith.constant dense<0.000000e+00> : vector<16x128xf32>
    %30 = tpu.matmul %29, %28, %cst_26 {dimension_numbers = #tpu.dot_dimension_numbers<[1], [0], [0], [1], [0, 0, 1, 1], [], []>} : vector<16x128xbf16>, vector<128x128xbf16>, vector<16x128xf32> -> vector<16x128xf32>
    %31 = vector.extract_strided_slice %28 {offsets = [0, 0], sizes = [16, 128], strides = [1, 1]} : vector<128x128xbf16> to vector<16x128xbf16>
    %c0_27 = arith.constant 0 : index
    %c0_28 = arith.constant 0 : index
    %32 = vector.load %arg10[%c0_27, %c0_28] : memref<128x128xbf16, #tpu.memory_space<vmem>>, vector<128x128xbf16>
    %cst_29 = arith.constant dense<0.000000e+00> : vector<16x128xf32>
    %33 = tpu.matmul %31, %32, %cst_29 {dimension_numbers = #tpu.dot_dimension_numbers<[1], [0], [0], [1], [0, 0, 1, 1], [], []>} : vector<16x128xbf16>, vector<128x128xbf16>, vector<16x128xf32> -> vector<16x128xf32>
    %34 = arith.truncf %30 : vector<16x128xf32> to vector<16x128xbf16>
    %c0_30 = arith.constant 0 : index
    %c0_31 = arith.constant 0 : index
    %35 = vector.load %arg11[%c0_30, %c0_31] : memref<128x128xbf16, #tpu.memory_space<vmem>>, vector<128x128xbf16>
    %cst_32 = arith.constant dense<0.000000e+00> : vector<16x128xf32>
    %36 = tpu.matmul %34, %35, %cst_32 {dimension_numbers = #tpu.dot_dimension_numbers<[1], [0], [0], [1], [0, 0, 1, 1], [], []>} : vector<16x128xbf16>, vector<128x128xbf16>, vector<16x128xf32> -> vector<16x128xf32>
    %37 = arith.addf %33, %36 : vector<16x128xf32>
    %c0_33 = arith.constant 0 : index
    %c0_34 = arith.constant 0 : index
    %38 = vector.load %arg12[%c0_33, %c0_34] : memref<1x128xf32, #tpu.memory_space<vmem>>, vector<1x128xf32>
    %39 = vector.broadcast %38 : vector<1x128xf32> to vector<16x128xf32>
    %40 = arith.addf %37, %39 : vector<16x128xf32>
    %c0_35 = arith.constant 0 : index
    %c0_36 = arith.constant 0 : index
    %41 = vector.load %arg13[%c0_35, %c0_36] : memref<16x128xf32, #tpu.memory_space<vmem>>, vector<16x128xf32>
    tpu.vector_store %arg13[%c0_35, %c0_36], %40 {strides = array<i32>} : memref<16x128xf32, #tpu.memory_space<vmem>>, vector<16x128xf32>,
    return
  }
}

</mosaic_0001>

<bundles_post_ra>
// kernel: sage_forward.1
= control target key start
LH: loop header
LB: loop body
LE: loop exit
PB: predicated region body
PF: predicated region fallthrough
CT: control target
= control target key end

     0   :  { %s1937_s3 = inlined_call_operand.vmem [shape: bf16[128,128], index: 3, kind: input, shape index: {}]   ;;  %s1938_s0 = inlined_call_operand.vmem [shape: bf16[128,128], index: 0, kind: input, shape index: {}]   ;;  %s1939_s5 = inlined_call_operand.vmem [shape: bf16[128,128], index: 5, kind: input, shape index: {}]   ;;  %s1940_s4 = inlined_call_operand.vmem [shape: bf16[128,128], index: 4, kind: input, shape index: {}]   ;;  %s1941_s6 = inlined_call_operand.vmem [shape: f32[1,128], index: 6, kind: input, shape index: {}]   ;;  %s1942_s7 = inlined_call_operand.vmem [shape: bf16[128,128], index: 7, kind: input, shape index: {}]   ;;  %s1943_s1 = inlined_call_operand.vmem [shape: bf16[128,128], index: 1, kind: input, shape index: {}]   ;;  %s1944_s8 = inlined_call_operand.vmem [shape: bf16[128,128], index: 8, kind: input, shape index: {}]   ;;  %s1945_s9 = inlined_call_operand.vmem [shape: f32[1,128], index: 9, kind: input, shape index: {}]   ;;  %s1946_s10 = inlined_call_operand.vmem [shape: bf16[128,128], index: 10, kind: input, shape index: {}]   ;;  %s1947_s2 = inlined_call_operand.vmem [shape: bf16[16,128], index: 2, kind: input, shape index: {}]   ;;  %s1948_s11 = inlined_call_operand.vmem [shape: bf16[128,128], index: 11, kind: input, shape index: {}]   ;;  %s1949_s12 = inlined_call_operand.vmem [shape: f32[1,128], index: 12, kind: input, shape index: {}]   ;;  %s1950_s13 = inlined_call_operand.vmem [shape: f32[16,128], index: 13, kind: output, shape index: {}]  }
   0x1   :  { %v1594_v0 = vld [vmem:[%s1937_s3 + $0x38] sm:$0xff]  ;;  %v1600_v1 = vld [vmem:[%s1937_s3 + $0x30] sm:$0xff]  ;;  %v1607_v2 = vld [vmem:[%s1937_s3 + $0x28] sm:$0xff] }
   0x2   :  { %1502 = vmatpush.bf16.msra.mxu3 %v1594_v0  ;;  %172 = vmatpush.bf16.msra.mxu0 %v1594_v0  ;;  %v1614_v3 = vld [vmem:[%s1937_s3 + $0x20] sm:$0xff]  ;;  %v1621_v4 = vld [vmem:[%s1937_s3 + $0x18] sm:$0xff]  ;;  %v1628_v5 = vld [vmem:[%s1937_s3 + $0x10] sm:$0xff] }
   0x3   :  { %v1635_v6 = vld [vmem:[%s1937_s3 + $0x8] sm:$0xff]  ;;  %v1642_v7 = vld [vmem:[%s1937_s3] sm:$0xff]  ;;  %v1443_v10 = vld [vmem:[%s1938_s0 + $0x30] sm:$0xff] }
   0x4   :  { %v1442_v8 = vld [vmem:[%s1938_s0 + $0x28] sm:$0xff]  ;;  %v1437_v9 = vld [vmem:[%s1938_s0] sm:$0xff]  ;;  %v1460_v12 = vld [vmem:[%s1939_s5 + $0x38] sm:$0xff] }
   0x5   :  { %v1438_v11 = vld [vmem:[%s1938_s0 + $0x8] sm:$0xff]  ;;  %1510 = vmatpush.bf16.msra.mxu2 %v1460_v12  ;;  %v1459_v13 = vld [vmem:[%s1939_s5 + $0x30] sm:$0xff]  ;;  %309 = vmatpush.bf16.msra.mxu1 %v1460_v12  ;;  %v1444_v15 = vld [vmem:[%s1938_s0 + $0x38] sm:$0xff] }
   0x6   :  { %1503 = vmatpush.bf16.msra.mxu3 %v1600_v1  ;;  %173 = vmatpush.bf16.msra.mxu0 %v1600_v1  ;;  %v1458_v14 = vld [vmem:[%s1939_s5 + $0x28] sm:$0xff]  ;;  %v1457_v16 = vld [vmem:[%s1939_s5 + $0x20] sm:$0xff]  ;;  %v1439_v17 = vld [vmem:[%s1938_s0 + $0x10] sm:$0xff] }
   0x7   :  { %v1456_v18 = vld [vmem:[%s1939_s5 + $0x18] sm:$0xff]  ;;  %v1441_v20 = vld [vmem:[%s1938_s0 + $0x20] sm:$0xff]  ;;  %v1455_v21 = vld [vmem:[%s1939_s5 + $0x10] sm:$0xff] }
   0x8   :  { %v1440_v19 = vld [vmem:[%s1938_s0 + $0x18] sm:$0xff]  ;;  %v1454_v22 = vld [vmem:[%s1939_s5 + $0x8] sm:$0xff]  ;;  %v1453_v23 = vld [vmem:[%s1939_s5] sm:$0xff] }
   0x9   :  { %1511 = vmatpush.bf16.msra.mxu2 %v1459_v13  ;;  %310 = vmatpush.bf16.msra.mxu1 %v1459_v13  ;;  %v1452_v24 = vld [vmem:[%s1940_s4 + $0x38] sm:$0xff]  ;;  %v1451_v25 = vld [vmem:[%s1940_s4 + $0x30] sm:$0xff]  ;;  %v1450_v27 = vld [vmem:[%s1940_s4 + $0x28] sm:$0xff] }
   0xa   :  { %1504 = vmatpush.bf16.msra.mxu3 %v1607_v2  ;;  %174 = vmatpush.bf16.msra.mxu0 %v1607_v2  ;;  %v1449_v28 = vld [vmem:[%s1940_s4 + $0x20] sm:$0xff]  ;;  %v1448_v31 = vld [vmem:[%s1940_s4 + $0x18] sm:$0xff]  ;;  %v1447_v32 = vld [vmem:[%s1940_s4 + $0x10] sm:$0xff] }
   0xb   :  { %v1446_v34 = vld [vmem:[%s1940_s4 + $0x8] sm:$0xff]  ;;  %v1445_v36 = vld [vmem:[%s1940_s4] sm:$0xff]  ;;  %v1476_v57 = vld [vmem:[%s1942_s7 + $0x38] sm:$0xff] }
   0xc   :  { %v1475_v58 = vld [vmem:[%s1942_s7 + $0x30] sm:$0xff]  ;;  %v1474_v60 = vld [vmem:[%s1942_s7 + $0x28] sm:$0xff]  ;;  %v1473_v61 = vld [vmem:[%s1942_s7 + $0x20] sm:$0xff] }
   0xd   :  { %1512 = vmatpush.bf16.msra.mxu2 %v1458_v14  ;;  %311 = vmatpush.bf16.msra.mxu1 %v1458_v14  ;;  %v1472_v63 = vld [vmem:[%s1942_s7 + $0x18] sm:$0xff]  ;;  %v1766_v12 = vld [vmem:[%s1941_s6] ss:$0 sm:$0xff] }
   0xe   :  { %1505 = vmatpush.bf16.msra.mxu3 %v1614_v3  ;;  %175 = vmatpush.bf16.msra.mxu0 %v1614_v3 }
  0x11   :  { %1513 = vmatpush.bf16.msra.mxu2 %v1457_v16  ;;  %312 = vmatpush.bf16.msra.mxu1 %v1457_v16 }
  0x12   :  { %1506 = vmatpush.bf16.msra.mxu3 %v1621_v4  ;;  %176 = vmatpush.bf16.msra.mxu0 %v1621_v4 }
  0x15   :  { %1514 = vmatpush.bf16.msra.mxu2 %v1456_v18  ;;  %313 = vmatpush.bf16.msra.mxu1 %v1456_v18 }
  0x16   :  { %1507 = vmatpush.bf16.msra.mxu3 %v1628_v5  ;;  %177 = vmatpush.bf16.msra.mxu0 %v1628_v5 }
  0x19   :  { %1515 = vmatpush.bf16.msra.mxu2 %v1455_v21  ;;  %314 = vmatpush.bf16.msra.mxu1 %v1455_v21 }
  0x1a   :  { %1508 = vmatpush.bf16.msra.mxu3 %v1635_v6  ;;  %178 = vmatpush.bf16.msra.mxu0 %v1635_v6 }
  0x1d   :  { %1516 = vmatpush.bf16.msra.mxu2 %v1454_v22  ;;  %315 = vmatpush.bf16.msra.mxu1 %v1454_v22 }
  0x1e   :  { %1509 = vmatpush.bf16.msra.mxu3 %v1642_v7  ;;  %179 = vmatpush.bf16.msra.mxu0 %v1642_v7 }
  0x21   :  { %205 = vmatmul.bf16.vlgmr.msra.gmra.mxu3 %v1442_v8  ;;  %180 = vmatmul.bf16.vlgmr.msra.gmra.mxu0 %v1437_v9 }
  0x22   :  { %1517 = vmatpush.bf16.msra.mxu2 %v1453_v23  ;;  %316 = vmatpush.bf16.msra.mxu1 %v1453_v23 }
  0x26   :  { %406 = vmatpush.bf16.msrb.mxu2 %v1452_v24  ;;  %797 = vmatpush.bf16.msrb.mxu1 %v1476_v57 }
  0x2a   :  { %407 = vmatpush.bf16.msrb.mxu2 %v1451_v25  ;;  %798 = vmatpush.bf16.msrb.mxu1 %v1475_v58 }
  0x2e   :  { %408 = vmatpush.bf16.msrb.mxu2 %v1450_v27  ;;  %799 = vmatpush.bf16.msrb.mxu1 %v1474_v60 }
  0x31   :  { %210 = vmatmul.bf16.gmra.mxu3 %v1443_v10  ;;  %185 = vmatmul.bf16.gmra.mxu0 %v1438_v11 }
  0x32   :  { %409 = vmatpush.bf16.msrb.mxu2 %v1449_v28  ;;  %800 = vmatpush.bf16.msrb.mxu1 %v1473_v61 }
  0x36   :  { %410 = vmatpush.bf16.msrb.mxu2 %v1448_v31  ;;  %801 = vmatpush.bf16.msrb.mxu1 %v1472_v63 }
  0x3a   :  { %411 = vmatpush.bf16.msrb.mxu2 %v1447_v32 }
  0x3e   :  { %412 = vmatpush.bf16.msrb.mxu2 %v1446_v34 }
  0x41   :  { %215 = vmatmul.bf16.gmra.mxu3 %v1444_v15  ;;  %190 = vmatmul.bf16.gmra.mxu0 %v1439_v17 }
  0x42   :  { %413 = vmatpush.bf16.msrb.mxu2 %v1445_v36 }
  0x51   :  { %195 = vmatmul.bf16.gmra.mxu0 %v1440_v19 }
  0x61   :  { %200 = vmatmul.bf16.gmra.mxu0 %v1441_v20 }
  0x9e   :  { %v181_v35 = vpop.f32.mrf.mxu0 }
  0xa4   :  { %v206_v26 = vpop.f32.mrf.mxu3 }
  0xa6   :  { %v183_v39 = vpop.f32.mrf.mxu0 }
  0xa7   :  { %v237_v40 = vpack.c.bf16 %v183_v39, %v181_v35 }
  0xa9   :  { %317 = vmatmul.bf16.vlgmr.msra.gmra.mxu1 %v237_v40 }
  0xac   :  { %v208_v29 = vpop.f32.mrf.mxu3 }
  0xad   :  { %v242_v30 = vpack.c.bf16 %v208_v29, %v206_v26 }
  0xae   :  { %v186_v42 = vpop.f32.mrf.mxu0 }
  0xaf   :  { %342 = vmatmul.bf16.vlgmr.msra.gmra.mxu2 %v242_v30 }
  0xb4   :  { %v211_v33 = vpop.f32.mrf.mxu3 }
  0xb6   :  { %v188_v45 = vpop.f32.mrf.mxu0 }
  0xb7   :  { %v238_v46 = vpack.c.bf16 %v188_v45, %v186_v42 }
  0xb9   :  { %322 = vmatmul.bf16.gmra.mxu1 %v238_v46 }
  0xbc   :  { %v213_v37 = vpop.f32.mrf.mxu3 }
  0xbd   :  { %v243_v38 = vpack.c.bf16 %v213_v37, %v211_v33 }
  0xbe   :  { %v191_v47 = vpop.f32.mrf.mxu0 }
  0xbf   :  { %347 = vmatmul.bf16.gmra.mxu2 %v243_v38 }
  0xc4   :  { %v216_v41 = vpop.f32.mrf.mxu3 }
  0xc6   :  { %v193_v48 = vpop.f32.mrf.mxu0 }
  0xc7   :  { %v239_v49 = vpack.c.bf16 %v193_v48, %v191_v47 }
  0xc9   :  { %327 = vmatmul.bf16.gmra.mxu1 %v239_v49 }
  0xcc   :  { %v218_v43 = vpop.f32.mrf.mxu3 }
  0xcd   :  { %v244_v44 = vpack.c.bf16 %v218_v43, %v216_v41 }
  0xce   :  { %v196_v50 = vpop.f32.mrf.mxu0 }
  0xcf   :  { %352 = vmatmul.bf16.gmra.mxu2 %v244_v44 }
  0xd6   :  { %v198_v51 = vpop.f32.mrf.mxu0 }
  0xd7   :  { %v240_v52 = vpack.c.bf16 %v198_v51, %v196_v50 }
  0xd9   :  { %332 = vmatmul.bf16.gmra.mxu1 %v240_v52 }
  0xde   :  { %v201_v53 = vpop.f32.mrf.mxu0 }
  0xdf   :  { %414 = vmatmul.bf16.vlgmr.msrb.gmra.mxu2 %v1642_v7 }
  0xe6   :  { %v203_v54 = vpop.f32.mrf.mxu0 }
  0xe7   :  { %v241_v55 = vpack.c.bf16 %v203_v54, %v201_v53 }
  0xe9   :  { %337 = vmatmul.bf16.gmra.mxu1 %v241_v55 }
  0xef   :  { %419 = vmatmul.bf16.gmra.mxu2 %v1635_v6 }
  0xff   :  { %424 = vmatmul.bf16.gmra.mxu2 %v1628_v5  ;;  %v1469_v5 = vld [vmem:[%s1942_s7] sm:$0xff] }
 0x10f   :  { %429 = vmatmul.bf16.gmra.mxu2 %v1621_v4  ;;  %v1470_v4 = vld [vmem:[%s1942_s7 + $0x8] sm:$0xff] }
 0x11f   :  { %434 = vmatmul.bf16.gmra.mxu2 %v1614_v3 }
 0x12f   :  { %439 = vmatmul.bf16.gmra.mxu2 %v1607_v2  ;;  %v1471_v2 = vld [vmem:[%s1942_s7 + $0x10] sm:$0xff] }
 0x130   :  { %802 = vmatpush.bf16.msrb.mxu1 %v1471_v2 }
 0x132   :  { %v1725_v56 = vpop.f32.mrf.mxu2 }
 0x134   :  { %803 = vmatpush.bf16.msrb.mxu1 %v1470_v4 }
 0x138   :  { %804 = vmatpush.bf16.msrb.mxu1 %v1469_v5 }
 0x13a   :  { %v1733_v59 = vpop.f32.mrf.mxu2 }
 0x13f   :  { %444 = vmatmul.bf16.gmra.mxu2 %v1600_v1  ;;  %v318_v1 = vpop.f32.mrf.mxu1 }
 0x142   :  { %v1742_v62 = vpop.f32.mrf.mxu2 }
 0x147   :  { %v320_v7 = vpop.f32.mrf.mxu1 }
 0x14a   :  { %v1750_v3 = vpop.f32.mrf.mxu2 }
 0x14f   :  { %449 = vmatmul.bf16.gmra.mxu2 %v1594_v0  ;;  %v323_v10 = vpop.f32.mrf.mxu1 }
 0x152   :  { %v1759_v6 = vpop.f32.mrf.mxu2 }
 0x157   :  { %v325_v16 = vpop.f32.mrf.mxu1 }
 0x15a   :  { %v1761_v8 = vpop.f32.mrf.mxu2 }
 0x15f   :  { %v328_v21 = vpop.f32.mrf.mxu1 }
 0x162   :  { %v415_v9 = vpop.f32.mrf.mxu2 }
 0x163   :  { %v416_v11 = vadd.f32 %v415_v9, %v318_v1 }
 0x165   :  { %v459_v14 = vadd.f32 %v1766_v12, %v416_v11 }
 0x167   :  { %v475_v17 = vmax.f32 %v459_v14, 0.0  ;;  %v330_v29 = vpop.f32.mrf.mxu1 }
 0x16a   :  { %v417_v13 = vpop.f32.mrf.mxu2 }
 0x16b   :  { %v418_v15 = vadd.f32 %v417_v13, %v320_v7 }
 0x16d   :  { %v460_v0 = vadd.f32 %v1766_v12, %v418_v15 }
 0x16f   :  { %v476_v18 = vmax.f32 %v460_v0, 0.0  ;;  %v333_v34 = vpop.f32.mrf.mxu1 }
 0x171   :  { %v1770_v19 = vpack.c.bf16 %v476_v18, %v475_v17 }
 0x172   :  { %v420_v20 = vpop.f32.mrf.mxu2 }
 0x173   :  { %805 = vmatmul.bf16.vlgmr.msrb.gmra.mxu1 %v1770_v19  ;;  %v421_v22 = vadd.f32 %v420_v20, %v323_v10 }
 0x175   :  { %v461_v24 = vadd.f32 %v1766_v12, %v421_v22 }
 0x177   :  { %v477_v27 = vmax.f32 %v461_v24, 0.0  ;;  %v335_v42 = vpop.f32.mrf.mxu1 }
 0x17a   :  { %v422_v23 = vpop.f32.mrf.mxu2 }
 0x17b   :  { %v423_v25 = vadd.f32 %v422_v23, %v325_v16 }
 0x17d   :  { %v462_v26 = vadd.f32 %v1766_v12, %v423_v25 }
 0x17f   :  { %v478_v28 = vmax.f32 %v462_v26, 0.0  ;;  %v338_v48 = vpop.f32.mrf.mxu1 }
 0x181   :  { %v1775_v30 = vpack.c.bf16 %v478_v28, %v477_v27 }
 0x182   :  { %v425_v31 = vpop.f32.mrf.mxu2 }
 0x183   :  { %810 = vmatmul.bf16.gmra.mxu1 %v1775_v30  ;;  %v426_v32 = vadd.f32 %v425_v31, %v328_v21  ;;  %v1466_v31 = vld [vmem:[%s1943_s1 + $0x28] sm:$0xff] }
 0x185   :  { %v463_v35 = vadd.f32 %v1766_v12, %v426_v32  ;;  %v1483_v32 = vld [vmem:[%s1944_s8 + $0x30] sm:$0xff] }
 0x187   :  { %v479_v38 = vmax.f32 %v463_v35, 0.0  ;;  %v340_v54 = vpop.f32.mrf.mxu1  ;;  %v1480_v35 = vld [vmem:[%s1944_s8 + $0x18] sm:$0xff] }
 0x18a   :  { %v427_v33 = vpop.f32.mrf.mxu2 }
 0x18b   :  { %v428_v36 = vadd.f32 %v427_v33, %v330_v29  ;;  %v1482_v33 = vld [vmem:[%s1944_s8 + $0x28] sm:$0xff] }
 0x18d   :  { %v464_v37 = vadd.f32 %v1766_v12, %v428_v36  ;;  %v1467_v36 = vld [vmem:[%s1943_s1 + $0x30] sm:$0xff] }
 0x18f   :  { %v480_v39 = vmax.f32 %v464_v37, 0.0  ;;  %v1479_v37 = vld [vmem:[%s1944_s8 + $0x10] sm:$0xff] }
 0x191   :  { %v493_v40 = vpack.c.bf16 %v480_v39, %v479_v38  ;;  %v1478_v38 = vld [vmem:[%s1944_s8 + $0x8] sm:$0xff]  ;;  %v1477_v39 = vld [vmem:[%s1944_s8] sm:$0xff] }
 0x192   :  { %v430_v41 = vpop.f32.mrf.mxu2 }
 0x193   :  { %815 = vmatmul.bf16.gmra.mxu1 %v493_v40  ;;  %v431_v43 = vadd.f32 %v430_v41, %v333_v34  ;;  %v1481_v34 = vld [vmem:[%s1944_s8 + $0x20] sm:$0xff] }
 0x195   :  { %v465_v45 = vadd.f32 %v1766_v12, %v431_v43 }
 0x197   :  { %v481_v49 = vmax.f32 %v465_v45, 0.0 }
 0x19a   :  { %v432_v44 = vpop.f32.mrf.mxu2 }
 0x19b   :  { %v433_v46 = vadd.f32 %v432_v44, %v335_v42 }
 0x19d   :  { %v466_v47 = vadd.f32 %v1766_v12, %v433_v46 }
 0x19f   :  { %v482_v50 = vmax.f32 %v466_v47, 0.0 }
 0x1a1   :  { %v494_v51 = vpack.c.bf16 %v482_v50, %v481_v49 }
 0x1a2   :  { %v435_v52 = vpop.f32.mrf.mxu2 }
 0x1a3   :  { %820 = vmatmul.bf16.gmra.mxu1 %v494_v51  ;;  %v436_v53 = vadd.f32 %v435_v52, %v338_v48 }
 0x1a5   :  { %v467_v57 = vadd.f32 %v1766_v12, %v436_v53 }
 0x1a7   :  { %v483_v61 = vmax.f32 %v467_v57, 0.0 }
 0x1aa   :  { %v437_v55 = vpop.f32.mrf.mxu2 }
 0x1ab   :  { %v438_v58 = vadd.f32 %v437_v55, %v340_v54 }
 0x1ad   :  { %v468_v60 = vadd.f32 %v1766_v12, %v438_v58 }
 0x1af   :  { %v484_v63 = vmax.f32 %v468_v60, 0.0 }
 0x1b1   :  { %v495_v2 = vpack.c.bf16 %v484_v63, %v483_v61 }
 0x1b2   :  { %v440_v4 = vpop.f32.mrf.mxu2 }
 0x1b3   :  { %825 = vmatmul.bf16.gmra.mxu1 %v495_v2  ;;  %v441_v1 = vadd.f32 %v440_v4, %v1725_v56 }
 0x1b5   :  { %v469_v7 = vadd.f32 %v1766_v12, %v441_v1 }
 0x1b7   :  { %v485_v11 = vmax.f32 %v469_v7, 0.0 }
 0x1ba   :  { %v442_v5 = vpop.f32.mrf.mxu2 }
 0x1bb   :  { %v443_v9 = vadd.f32 %v442_v5, %v1733_v59 }
 0x1bd   :  { %v470_v10 = vadd.f32 %v1766_v12, %v443_v9 }
 0x1bf   :  { %v486_v13 = vmax.f32 %v470_v10, 0.0 }
 0x1c1   :  { %v496_v14 = vpack.c.bf16 %v486_v13, %v485_v11 }
 0x1c2   :  { %v445_v15 = vpop.f32.mrf.mxu2 }
 0x1c3   :  { %830 = vmatmul.bf16.gmra.mxu1 %v496_v14  ;;  %v446_v16 = vadd.f32 %v445_v15, %v1742_v62  ;;  %v1849_v15 = vld [vmem:[%s1945_s9] ss:$0 sm:$0xff] }
 0x1c5   :  { %v471_v17 = vadd.f32 %v1766_v12, %v446_v16 }
 0x1c7   :  { %v487_v20 = vmax.f32 %v471_v17, 0.0 }
 0x1ca   :  { %v447_v0 = vpop.f32.mrf.mxu2 }
 0x1cb   :  { %v448_v18 = vadd.f32 %v447_v0, %v1750_v3  ;;  %v1461_v3 = vld [vmem:[%s1943_s1] sm:$0xff] }
 0x1cd   :  { %v472_v56 = vadd.f32 %v1766_v12, %v448_v18 }
 0x1cf   :  { %v488_v21 = vmax.f32 %v472_v56, 0.0 }
 0x1d1   :  { %v497_v22 = vpack.c.bf16 %v488_v21, %v487_v20 }
 0x1d2   :  { %v450_v59 = vpop.f32.mrf.mxu2 }
 0x1d3   :  { %835 = vmatmul.bf16.gmra.mxu1 %v497_v22  ;;  %v451_v23 = vadd.f32 %v450_v59, %v1759_v6  ;;  %v1462_v6 = vld [vmem:[%s1943_s1 + $0x8] sm:$0xff] }
 0x1d5   :  { %v473_v25 = vadd.f32 %v1766_v12, %v451_v23 }
 0x1d7   :  { %v489_v27 = vmax.f32 %v473_v25, 0.0 }
 0x1da   :  { %v452_v24 = vpop.f32.mrf.mxu2 }
 0x1db   :  { %v453_v26 = vadd.f32 %v452_v24, %v1761_v8  ;;  %v1463_v8 = vld [vmem:[%s1943_s1 + $0x10] sm:$0xff] }
 0x1dd   :  { %v474_v62 = vadd.f32 %v1766_v12, %v453_v26  ;;  %v1464_v12 = vld [vmem:[%s1943_s1 + $0x18] sm:$0xff] }
 0x1df   :  { %v490_v28 = vmax.f32 %v474_v62, 0.0 }
 0x1e1   :  { %v498_v29 = vpack.c.bf16 %v490_v28, %v489_v27 }
 0x1e3   :  { %563 = vmatpush.bf16.msrb.mxu3 %v498_v29  ;;  %840 = vmatmul.bf16.gmra.mxu1 %v498_v29 }
 0x1e7   :  { %564 = vmatpush.bf16.msrb.mxu3 %v497_v22 }
 0x1eb   :  { %565 = vmatpush.bf16.msrb.mxu3 %v496_v14 }
 0x1ef   :  { %566 = vmatpush.bf16.msrb.mxu3 %v495_v2 }
 0x1f0   :  { %v806_v4 = vpop.f32.mrf.mxu1 }
 0x1f3   :  { %567 = vmatpush.bf16.msrb.mxu3 %v494_v51 }
 0x1f7   :  { %568 = vmatpush.bf16.msrb.mxu3 %v493_v40  ;;  %v1468_v40 = vld [vmem:[%s1943_s1 + $0x38] sm:$0xff] }
 0x1f8   :  { %v808_v5 = vpop.f32.mrf.mxu1 }
 0x1fb   :  { %569 = vmatpush.bf16.msrb.mxu3 %v1775_v30  ;;  %v1484_v30 = vld [vmem:[%s1944_s8 + $0x38] sm:$0xff] }
 0x1fc   :  { %700 = vmatpush.bf16.msrb.mxu0 %v1484_v30 }
 0x1ff   :  { %570 = vmatpush.bf16.msrb.mxu3 %v1770_v19  ;;  %v1465_v19 = vld [vmem:[%s1943_s1 + $0x20] sm:$0xff] }
 0x200   :  { %701 = vmatpush.bf16.msrb.mxu0 %v1483_v32  ;;  %v811_v10 = vpop.f32.mrf.mxu1 }
 0x202   :  { %571 = vmatmul.bf16.vlgmr.msrb.gmra.mxu3 %v1461_v3 }
 0x204   :  { %702 = vmatpush.bf16.msrb.mxu0 %v1482_v33 }
 0x208   :  { %703 = vmatpush.bf16.msrb.mxu0 %v1481_v34  ;;  %v813_v11 = vpop.f32.mrf.mxu1 }
 0x20c   :  { %704 = vmatpush.bf16.msrb.mxu0 %v1480_v35 }
 0x210   :  { %705 = vmatpush.bf16.msrb.mxu0 %v1479_v37  ;;  %v816_v56 = vpop.f32.mrf.mxu1 }
 0x212   :  { %576 = vmatmul.bf16.gmra.mxu3 %v1462_v6 }
 0x214   :  { %706 = vmatpush.bf16.msrb.mxu0 %v1478_v38 }
 0x218   :  { %707 = vmatpush.bf16.msrb.mxu0 %v1477_v39  ;;  %v818_v27 = vpop.f32.mrf.mxu1 }
 0x220   :  { %v821_v30 = vpop.f32.mrf.mxu1 }
 0x222   :  { %581 = vmatmul.bf16.gmra.mxu3 %v1463_v8 }
 0x228   :  { %v823_v38 = vpop.f32.mrf.mxu1 }
 0x232   :  { %586 = vmatmul.bf16.gmra.mxu3 %v1464_v12 }
 0x242   :  { %591 = vmatmul.bf16.gmra.mxu3 %v1465_v19 }
 0x252   :  { %596 = vmatmul.bf16.gmra.mxu3 %v1466_v31 }
 0x262   :  { %601 = vmatmul.bf16.gmra.mxu3 %v1467_v36 }
 0x272   :  { %606 = vmatmul.bf16.gmra.mxu3 %v1468_v40 }
 0x285   :  { %v572_v41 = vpop.f32.mrf.mxu3 }
 0x28d   :  { %v574_v42 = vpop.f32.mrf.mxu3 }
 0x28e   :  { %v628_v43 = vpack.c.bf16 %v574_v42, %v572_v41 }
 0x290   :  { %708 = vmatmul.bf16.vlgmr.msrb.gmra.mxu0 %v628_v43 }
 0x295   :  { %v577_v44 = vpop.f32.mrf.mxu3 }
 0x29d   :  { %v579_v45 = vpop.f32.mrf.mxu3 }
 0x29e   :  { %v629_v46 = vpack.c.bf16 %v579_v45, %v577_v44 }
 0x2a0   :  { %713 = vmatmul.bf16.gmra.mxu0 %v629_v46 }
 0x2a5   :  { %v582_v47 = vpop.f32.mrf.mxu3 }
 0x2ad   :  { %v584_v48 = vpop.f32.mrf.mxu3 }
 0x2ae   :  { %v630_v49 = vpack.c.bf16 %v584_v48, %v582_v47 }
 0x2b0   :  { %718 = vmatmul.bf16.gmra.mxu0 %v630_v49 }
 0x2b5   :  { %v587_v50 = vpop.f32.mrf.mxu3 }
 0x2bd   :  { %v589_v51 = vpop.f32.mrf.mxu3 }
 0x2be   :  { %v631_v52 = vpack.c.bf16 %v589_v51, %v587_v50  ;;  %v826_v50 = vpop.f32.mrf.mxu1 }
 0x2c0   :  { %723 = vmatmul.bf16.gmra.mxu0 %v631_v52 }
 0x2c5   :  { %v592_v53 = vpop.f32.mrf.mxu3 }
 0x2cd   :  { %v594_v54 = vpop.f32.mrf.mxu3 }
 0x2ce   :  { %v632_v55 = vpack.c.bf16 %v594_v54, %v592_v53 }
 0x2d0   :  { %728 = vmatmul.bf16.gmra.mxu0 %v632_v55 }
 0x2d5   :  { %v597_v57 = vpop.f32.mrf.mxu3 }
 0x2dd   :  { %v599_v58 = vpop.f32.mrf.mxu3 }
 0x2de   :  { %v633_v60 = vpack.c.bf16 %v599_v58, %v597_v57  ;;  %v828_v58 = vpop.f32.mrf.mxu1 }
 0x2e0   :  { %733 = vmatmul.bf16.gmra.mxu0 %v633_v60 }
 0x2e5   :  { %v602_v61 = vpop.f32.mrf.mxu3 }
 0x2ed   :  { %v604_v63 = vpop.f32.mrf.mxu3 }
 0x2ee   :  { %v634_v2 = vpack.c.bf16 %v604_v63, %v602_v61 }
 0x2f0   :  { %738 = vmatmul.bf16.gmra.mxu0 %v634_v2 }
 0x2f5   :  { %v607_v1 = vpop.f32.mrf.mxu3 }
 0x2fd   :  { %v609_v7 = vpop.f32.mrf.mxu3 }
 0x2fe   :  { %v635_v9 = vpack.c.bf16 %v609_v7, %v607_v1 }
 0x300   :  { %743 = vmatmul.bf16.gmra.mxu0 %v635_v9  ;;  %v831_v9 = vpop.f32.mrf.mxu1 }
 0x30d   :  { %v709_v13 = vpop.f32.mrf.mxu0 }
 0x30e   :  { %v807_v14 = vadd.f32 %v806_v4, %v709_v13 }
 0x310   :  { %v850_v16 = vadd.f32 %v1849_v15, %v807_v14 }
 0x312   :  { %v866_v17 = vmax.f32 %v850_v16, 0.0 }
 0x314   :  { %v882_v21 = vpack.c.bf16 %v866_v17, %v866_v17 }
 0x315   :  { %v711_v0 = vpop.f32.mrf.mxu0 }
 0x316   :  { %v809_v18 = vadd.f32 %v808_v5, %v711_v0  ;;  %v922_v24 = vunpack.c.l.b16 %v882_v21 }
 0x318   :  { %v851_v20 = vadd.f32 %v1849_v15, %v809_v18 }
 0x31a   :  { %v867_v22 = vmax.f32 %v851_v20, 0.0 }
 0x31c   :  { %v883_v59 = vpack.c.bf16 %v867_v22, %v867_v22 }
 0x31d   :  { %v714_v23 = vpop.f32.mrf.mxu0 }
 0x31e   :  { %v923_v25 = vunpack.c.l.b16 %v883_v59  ;;  %v812_v26 = vadd.f32 %v811_v10, %v714_v23 }
 0x320   :  { %v1853_v62 = vpack.c.b16 %v923_v25, %v922_v24  ;;  %v852_v28 = vadd.f32 %v1849_v15, %v812_v26 }
 0x322   :  { %v868_v3 = vmax.f32 %v852_v28, 0.0 }
 0x324   :  { %v884_v12 = vpack.c.bf16 %v868_v3, %v868_v3 }
 0x325   :  { %v716_v29 = vpop.f32.mrf.mxu0 }
 0x326   :  { %v814_v6 = vadd.f32 %v813_v11, %v716_v29  ;;  %v924_v33 = vunpack.c.l.b16 %v884_v12  ;;  %v833_v11 = vpop.f32.mrf.mxu1 }
 0x328   :  { %v853_v8 = vadd.f32 %v1849_v15, %v814_v6 }
 0x32a   :  { %v869_v19 = vmax.f32 %v853_v8, 0.0 }
 0x32c   :  { %v885_v31 = vpack.c.bf16 %v869_v19, %v869_v19 }
 0x32d   :  { %v719_v32 = vpop.f32.mrf.mxu0 }
 0x32e   :  { %v925_v34 = vunpack.c.l.b16 %v885_v31  ;;  %v817_v35 = vadd.f32 %v816_v56, %v719_v32  ;;  %v836_v16 = vpop.f32.mrf.mxu1 }
 0x330   :  { %v1857_v36 = vpack.c.b16 %v925_v34, %v924_v33  ;;  %v854_v37 = vadd.f32 %v1849_v15, %v817_v35 }
 0x332   :  { %v870_v40 = vmax.f32 %v854_v37, 0.0 }
 0x334   :  { %v886_v43 = vpack.c.bf16 %v870_v40, %v870_v40 }
 0x335   :  { %v721_v39 = vpop.f32.mrf.mxu0 }
 0x336   :  { %v819_v41 = vadd.f32 %v818_v27, %v721_v39  ;;  %v926_v47 = vunpack.c.l.b16 %v886_v43  ;;  %v838_v17 = vpop.f32.mrf.mxu1 }
 0x338   :  { %v855_v42 = vadd.f32 %v1849_v15, %v819_v41 }
 0x33a   :  { %v871_v44 = vmax.f32 %v855_v42, 0.0 }
 0x33c   :  { %v887_v45 = vpack.c.bf16 %v871_v44, %v871_v44 }
 0x33d   :  { %v724_v46 = vpop.f32.mrf.mxu0 }
 0x33e   :  { %v927_v48 = vunpack.c.l.b16 %v887_v45  ;;  %v822_v49 = vadd.f32 %v821_v30, %v724_v46  ;;  %v841_v56 = vpop.f32.mrf.mxu1 }
 0x340   :  { %v1861_v51 = vpack.c.b16 %v927_v48, %v926_v47  ;;  %v856_v52 = vadd.f32 %v1849_v15, %v822_v49 }
 0x342   :  { %v872_v54 = vmax.f32 %v856_v52, 0.0 }
 0x344   :  { %v888_v60 = vpack.c.bf16 %v872_v54, %v872_v54 }
 0x345   :  { %v726_v53 = vpop.f32.mrf.mxu0 }
 0x346   :  { %v824_v55 = vadd.f32 %v823_v38, %v726_v53  ;;  %v928_v4 = vunpack.c.l.b16 %v888_v60  ;;  %v843_v26 = vpop.f32.mrf.mxu1 }
 0x348   :  { %v857_v57 = vadd.f32 %v1849_v15, %v824_v55 }
 0x34a   :  { %v873_v61 = vmax.f32 %v857_v57, 0.0 }
 0x34c   :  { %v889_v63 = vpack.c.bf16 %v873_v61, %v873_v61 }
 0x34d   :  { %v729_v2 = vpop.f32.mrf.mxu0 }
 0x34e   :  { %v929_v1 = vunpack.c.l.b16 %v889_v63  ;;  %v827_v5 = vadd.f32 %v826_v50, %v729_v2  ;;  %v1493_v2 = vld [vmem:[%s1946_s10 + $0x38] sm:$0xff] }
 0x350   :  { %v941_v7 = vpack.c.b16 %v929_v1, %v928_v4  ;;  %v858_v40 = vadd.f32 %v1849_v15, %v827_v5  ;;  %v1485_v4 = vld [vmem:[%s1947_s2] sm:$0xff]  ;;  %v1501_v1 = vld [vmem:[%s1948_s11 + $0x38] sm:$0xff]  ;;  %v1491_v5 = vld [vmem:[%s1946_s10 + $0x28] sm:$0xff] }
 0x351   :  { %1049 = vmatpush.bf16.msra.mxu3 %v1501_v1 }
 0x352   :  { %v874_v49 = vmax.f32 %v858_v40, 0.0 }
 0x354   :  { %v890_v57 = vpack.c.bf16 %v874_v49, %v874_v49 }
 0x355   :  { %v731_v10 = vpop.f32.mrf.mxu0 }
 0x356   :  { %v829_v8 = vadd.f32 %v828_v58, %v731_v10  ;;  %v930_v61 = vunpack.c.l.b16 %v890_v57  ;;  %v1498_v10 = vld [vmem:[%s1948_s11 + $0x20] sm:$0xff] }
 0x358   :  { %v859_v35 = vadd.f32 %v1849_v15, %v829_v8 }
 0x35a   :  { %v875_v45 = vmax.f32 %v859_v35, 0.0 }
 0x35c   :  { %v891_v53 = vpack.c.bf16 %v875_v45, %v875_v45 }
 0x35d   :  { %v734_v13 = vpop.f32.mrf.mxu0 }
 0x35e   :  { %v832_v28 = vadd.f32 %v831_v9, %v734_v13  ;;  %v931_v60 = vunpack.c.l.b16 %v891_v53  ;;  %v1490_v9 = vld [vmem:[%s1946_s10 + $0x20] sm:$0xff]  ;;  %v1497_v13 = vld [vmem:[%s1948_s11 + $0x18] sm:$0xff] }
 0x360   :  { %v860_v31 = vadd.f32 %v1849_v15, %v832_v28  ;;  %v942_v63 = vpack.c.b16 %v931_v60, %v930_v61 }
 0x362   :  { %v876_v41 = vmax.f32 %v860_v31, 0.0 }
 0x364   :  { %v892_v50 = vpack.c.bf16 %v876_v41, %v876_v41 }
 0x365   :  { %v736_v14 = vpop.f32.mrf.mxu0 }
 0x366   :  { %v834_v24 = vadd.f32 %v833_v11, %v736_v14  ;;  %v932_v58 = vunpack.c.l.b16 %v892_v50  ;;  %v1489_v11 = vld [vmem:[%s1946_s10 + $0x18] sm:$0xff]  ;;  %v1488_v14 = vld [vmem:[%s1946_s10 + $0x10] sm:$0xff] }
 0x368   :  { %v861_v12 = vadd.f32 %v1849_v15, %v834_v24 }
 0x36a   :  { %v877_v37 = vmax.f32 %v861_v12, 0.0 }
 0x36c   :  { %v893_v46 = vpack.c.bf16 %v877_v37, %v877_v37 }
 0x36d   :  { %v739_v0 = vpop.f32.mrf.mxu0 }
 0x36e   :  { %v837_v59 = vadd.f32 %v836_v16, %v739_v0  ;;  %v933_v54 = vunpack.c.l.b16 %v893_v46  ;;  %v1487_v16 = vld [vmem:[%s1946_s10 + $0x8] sm:$0xff]  ;;  %v1486_v0 = vld [vmem:[%s1946_s10] sm:$0xff] }
 0x370   :  { %v862_v29 = vadd.f32 %v1849_v15, %v837_v59  ;;  %v1520_v59 = vld [vmem:[%s1949_s12] ss:$0 sm:$0xff] }
 0x372   :  { %v878_v32 = vmax.f32 %v862_v29, 0.0 }
 0x374   :  { %v894_v42 = vpack.c.bf16 %v878_v32, %v878_v32 }
 0x375   :  { %v741_v18 = vpop.f32.mrf.mxu0 }
 0x376   :  { %v839_v22 = vadd.f32 %v838_v17, %v741_v18  ;;  %v934_v52 = vunpack.c.l.b16 %v894_v42  ;;  %v1496_v17 = vld [vmem:[%s1948_s11 + $0x10] sm:$0xff]  ;;  %v1495_v18 = vld [vmem:[%s1948_s11 + $0x8] sm:$0xff] }
 0x378   :  { %v863_v25 = vadd.f32 %v1849_v15, %v839_v22 }
 0x37a   :  { %v879_v19 = vmax.f32 %v863_v25, 0.0 }
 0x37c   :  { %v895_v38 = vpack.c.bf16 %v879_v19, %v879_v19 }
 0x37d   :  { %v744_v20 = vpop.f32.mrf.mxu0 }
 0x37e   :  { %v842_v21 = vadd.f32 %v841_v56, %v744_v20  ;;  %v935_v47 = vunpack.c.l.b16 %v895_v38  ;;  %v1494_v56 = vld [vmem:[%s1948_s11] sm:$0xff] }
 0x380   :  { %v864_v23 = vadd.f32 %v1849_v15, %v842_v21  ;;  %v944_v55 = vpack.c.b16 %v935_v47, %v934_v52 }
 0x382   :  { %v880_v3 = vmax.f32 %v864_v23, 0.0 }
 0x384   :  { %v896_v33 = vpack.c.bf16 %v880_v3, %v880_v3 }
 0x385   :  { %v746_v27 = vpop.f32.mrf.mxu0 }
 0x386   :  { %v844_v6 = vadd.f32 %v843_v26, %v746_v27  ;;  %v936_v43 = vunpack.c.l.b16 %v896_v33 }
 0x388   :  { %v865_v30 = vadd.f32 %v1849_v15, %v844_v6  ;;  %v943_v15 = vpack.c.b16 %v933_v54, %v932_v58 }
 0x38a   :  { %v881_v34 = vmax.f32 %v865_v30, 0.0 }
 0x38c   :  { %v897_v39 = vpack.c.bf16 %v881_v34, %v881_v34 }
 0x38e   :  { %v937_v44 = vunpack.c.l.b16 %v897_v39 }
 0x390   :  { %v945_v48 = vpack.c.b16 %v937_v44, %v936_v43 }
 0x392   :  { %954 = vmatpush.bf16.msra.mxu2 %v945_v48 }
 0x396   :  { %955 = vmatpush.bf16.msra.mxu2 %v944_v55 }
 0x39a   :  { %956 = vmatpush.bf16.msra.mxu2 %v943_v15 }
 0x39e   :  { %957 = vmatpush.bf16.msra.mxu2 %v942_v63 }
 0x3a2   :  { %958 = vmatpush.bf16.msra.mxu2 %v941_v7  ;;  %v1499_v7 = vld [vmem:[%s1948_s11 + $0x28] sm:$0xff] }
 0x3a6   :  { %959 = vmatpush.bf16.msra.mxu2 %v1861_v51  ;;  %v1492_v51 = vld [vmem:[%s1946_s10 + $0x30] sm:$0xff] }
 0x3aa   :  { %960 = vmatpush.bf16.msra.mxu2 %v1857_v36  ;;  %v1500_v36 = vld [vmem:[%s1948_s11 + $0x30] sm:$0xff] }
 0x3ab   :  { %1050 = vmatpush.bf16.msra.mxu3 %v1500_v36 }
 0x3ae   :  { %961 = vmatpush.bf16.msra.mxu2 %v1853_v62 }
 0x3af   :  { %1051 = vmatpush.bf16.msra.mxu3 %v1499_v7 }
 0x3b1   :  { %962 = vmatmul.bf16.vlgmr.msra.gmra.mxu2 %v1485_v4 }
 0x3b2   :  { %1111 = vmatpush.bf16.msrb.mxu2 %v1493_v2 }
 0x3b3   :  { %1052 = vmatpush.bf16.msra.mxu3 %v1498_v10 }
 0x3b6   :  { %1112 = vmatpush.bf16.msrb.mxu2 %v1492_v51 }
 0x3b7   :  { %1053 = vmatpush.bf16.msra.mxu3 %v1497_v13 }
 0x3ba   :  { %1113 = vmatpush.bf16.msrb.mxu2 %v1491_v5 }
 0x3bb   :  { %1054 = vmatpush.bf16.msra.mxu3 %v1496_v17 }
 0x3be   :  { %1114 = vmatpush.bf16.msrb.mxu2 %v1490_v9 }
 0x3bf   :  { %1055 = vmatpush.bf16.msra.mxu3 %v1495_v18 }
 0x3c2   :  { %1115 = vmatpush.bf16.msrb.mxu2 %v1489_v11 }
 0x3c3   :  { %1056 = vmatpush.bf16.msra.mxu3 %v1494_v56 }
 0x3c6   :  { %1116 = vmatpush.bf16.msrb.mxu2 %v1488_v14 }
 0x3ca   :  { %1117 = vmatpush.bf16.msrb.mxu2 %v1487_v16 }
 0x3ce   :  { %1118 = vmatpush.bf16.msrb.mxu2 %v1486_v0 }
 0x3d1   :  { %1119 = vmatmul.bf16.vlgmr.msrb.gmra.mxu2 %v1853_v62 }
 0x434   :  { %v963_v20 = vpop.f32.mrf.mxu2 }
 0x43c   :  { %v965_v21 = vpop.f32.mrf.mxu2 }
 0x43d   :  { %v984_v22 = vpack.c.bf16 %v965_v21, %v963_v20 }
 0x43f   :  { %1057 = vmatmul.bf16.vlgmr.msra.gmra.mxu3 %v984_v22 }
 0x454   :  { %v1120_v62 = vpop.f32.mrf.mxu2 }
 0x45c   :  { %v1122_v26 = vpop.f32.mrf.mxu2 }
 0x4c2   :  { %v1058_v23 = vpop.f32.mrf.mxu3 }
 0x4c3   :  { %v1121_v24 = vadd.f32 %v1120_v62, %v1058_v23 }
 0x4c5   :  { %v1129_v25 = vadd.f32 %v1520_v59, %v1121_v24 }
 0x4c7   :  { %1131 = vst [vmem:[%s1950_s13] sm:$0xff] %v1129_v25 }
 0x4ca   :  { %v1060_v27 = vpop.f32.mrf.mxu3 }
 0x4cb   :  { %v1123_v28 = vadd.f32 %v1122_v26, %v1060_v27 }
 0x4cd   :  { %v1130_v29 = vadd.f32 %v1520_v59, %v1123_v28 }
 0x4cf   :  { %1132 = vst [vmem:[%s1950_s13 + $0x8] sm:$0xff] %v1130_v29 }

</bundles_post_ra>
